<compile_context>
chip_gen: v5e
topology: v5e:2x2
jax: 0.10.0
libtpu: 0.0.40
codegen_flags: <defaults>
</compile_context>

<pallas_src>
import jax
import jax.numpy as jnp
from jax.experimental import pallas as pl
from jax.experimental.pallas import tpu as pltpu


def _round_up(x: int, m: int) -> int:
    return ((x + m - 1) // m) * m


def _make_mlp_kernel(activations):
    """Build a fused MLP kernel for a fixed (static) list of per-layer activations."""
    n_layers = len(activations)

    def kernel(x_ref, *args):
        # args = (w0, b0, w1, b1, ..., w_{L-1}, b_{L-1}, o_ref)
        o_ref = args[2 * n_layers]
        h = x_ref[...]  # (tile_b, in_dim) f32
        for li, act in enumerate(activations):
            w = args[2 * li][...]        # (d_in, d_out) f32, resident in VMEM
            b = args[2 * li + 1][...]    # (1, d_out)   f32, resident in VMEM
            h = jnp.dot(h, w, preferred_element_type=jnp.float32) + b
            if act == "relu":
                h = jnp.maximum(h, 0.0)
            elif act == "tanh":
                h = jnp.tanh(h)
            elif act == "none":
                pass
        o_ref[...] = h.astype(o_ref.dtype)

    return kernel


def vpg_gaussian_policy_mlp_forward(x, params, activations, *, max_tile_b=512):
    """Fused forward: trunk MLP + Gaussian policy head.

    x           : (B, obs_dim) float array
    params      : list of (w, b) with w: (d_in, d_out), b: (d_out,)
                  (trunk layers first, final entry is the head Linear)
    activations : per-layer activation names, last one is 'tanh' (head)
    """
    assert len(params) == len(activations)
    for a in activations:
        assert a in ("relu", "tanh", "none"), f"Unrecognized activation type: {a}"

    batch, in_dim = x.shape
    out_dim = params[-1][0].shape[1]

    # Large row tile (multiple of 8) to amortize per-grid-step pipeline overhead;
    # single grid step (no padding, no trailing slice) whenever B <= max_tile_b.
    tile_b = min(max_tile_b, _round_up(batch, 8))
    b_pad = _round_up(batch, tile_b)

    x_in = x.astype(jnp.float32)
    if b_pad != batch:
        x_in = jnp.pad(x_in, ((0, b_pad - batch), (0, 0)))

    grid = (b_pad // tile_b,)

    in_specs = [pl.BlockSpec((tile_b, in_dim), lambda i: (i, 0))]
    flat_params = []
    for (w, bias) in params:
        d_in, d_out = w.shape
        # Weights/biases: full-array blocks, constant index_map -> resident in VMEM.
        in_specs.append(pl.BlockSpec((d_in, d_out), lambda i: (0, 0)))
        in_specs.append(pl.BlockSpec((1, d_out), lambda i: (0, 0)))
        flat_params.append(w.astype(jnp.float32))
        flat_params.append(bias.reshape(1, d_out).astype(jnp.float32))

    out_spec = pl.BlockSpec((tile_b, out_dim), lambda i: (i, 0))

    # Explicit VMEM budget: double-buffered x / out tiles + resident params + headroom.
    param_bytes = sum(int(p.size) * 4 for p in flat_params)
    io_bytes = 2 * tile_b * in_dim * 4 + 2 * tile_b * out_dim * 4
    vmem_limit = min(100 << 20, max(8 << 20, 2 * param_bytes + 2 * io_bytes + (4 << 20)))

    out = pl.pallas_call(
        _make_mlp_kernel(tuple(activations)),
        out_shape=jax.ShapeDtypeStruct((b_pad, out_dim), jnp.float32),
        grid_spec=pltpu.PrefetchScalarGridSpec(
            num_scalar_prefetch=0,
            grid=grid,
            in_specs=in_specs,
            out_specs=out_spec,
        ),
        compiler_params=pltpu.CompilerParams(
            dimension_semantics=("parallel",),   # rows shard across v7x's 2 TCs
            vmem_limit_bytes=int(vmem_limit),
        ),
    )(x_in, *flat_params)

    if b_pad != batch:
        out = out[:batch]
    return out


def _ref_forward(x, params, activations):
    h = x.astype(jnp.float32)
    for (w, b), act in zip(params, activations):
        h = h @ w.astype(jnp.float32) + b.reshape(1, -1).astype(jnp.float32)
        if act == "relu":
            h = jnp.maximum(h, 0.0)
        elif act == "tanh":
            h = jnp.tanh(h)
    return h


if __name__ == "__main__":
    key = jax.random.PRNGKey(0)

    # Small config consistent with the module:
    #   obs_dim=16 (Box obs), num_layers=2, layer_size=32, activation='tanh',
    #   act_dim=4 (Box action with bounds +/-1 => no ScaleLayer1d), batch=8.
    batch, obs_dim, hidden, num_layers, act_dim = 8, 16, 32, 2, 4
    activations = ["tanh"] * num_layers + ["tanh"]  # trunk acts + head tanh
    layer_dims = [(obs_dim, hidden)] + [(hidden, hidden)] * (num_layers - 1) + [(hidden, act_dim)]

    params = []
    for (d_in, d_out) in layer_dims:
        key, kw, kb = jax.random.split(key, 3)
        bound = 1.0 / (d_in ** 0.5)  # PyTorch nn.Linear default init range
        w = jax.random.uniform(kw, (d_in, d_out), jnp.float32, -bound, bound)
        b = jax.random.uniform(kb, (d_out,), jnp.float32, -bound, bound)
        params.append((w, b))

    key, kx = jax.random.split(key)
    x = jax.random.normal(kx, (batch, obs_dim), jnp.float32)

    y = vpg_gaussian_policy_mlp_forward(x, params, activations)
    y = jax.block_until_ready(y)

    y_ref = _ref_forward(x, params, activations)
    assert y.shape == (batch, act_dim)
    assert y.dtype == jnp.float32
    assert bool(jnp.allclose(y, y_ref, atol=2e-5, rtol=2e-5))

    print("KERNEL_OK")
</pallas_src>

<mosaic_0001>
module attributes {stable_mosaic.version = 11 : i64} {
  func.func @kernel(%arg0: i32, %arg1: memref<8x16xf32, #tpu.memory_space<vmem>>, %arg2: memref<16x32xf32, #tpu.memory_space<vmem>>, %arg3: memref<1x32xf32, #tpu.memory_space<vmem>>, %arg4: memref<32x32xf32, #tpu.memory_space<vmem>>, %arg5: memref<1x32xf32, #tpu.memory_space<vmem>>, %arg6: memref<32x4xf32, #tpu.memory_space<vmem>>, %arg7: memref<1x4xf32, #tpu.memory_space<vmem>>, %arg8: memref<8x4xf32, #tpu.memory_space<vmem>>) attributes {dimension_semantics = [#tpu.dimension_semantics<parallel>], iteration_bounds = array<i64: 1>, scalar_prefetch = 0 : i64, scratch_operands = 0 : i64, tpu.core_type = #tpu.core_type<tc>, window_params = [{transform_indices = @transform_0, window_bounds = array<i64: 8, 16>}, {pipeline_mode = #tpu.pipeline_mode<synchronous>, transform_indices = @transform_1, window_bounds = array<i64: 16, 32>}, {pipeline_mode = #tpu.pipeline_mode<synchronous>, transform_indices = @transform_2, window_bounds = array<i64: 1, 32>}, {pipeline_mode = #tpu.pipeline_mode<synchronous>, transform_indices = @transform_3, window_bounds = array<i64: 32, 32>}, {pipeline_mode = #tpu.pipeline_mode<synchronous>, transform_indices = @transform_4, window_bounds = array<i64: 1, 32>}, {pipeline_mode = #tpu.pipeline_mode<synchronous>, transform_indices = @transform_5, window_bounds = array<i64: 32, 4>}, {pipeline_mode = #tpu.pipeline_mode<synchronous>, transform_indices = @transform_6, window_bounds = array<i64: 1, 4>}, {transform_indices = @transform_7, window_bounds = array<i64: 8, 4>}]} {
    %c0 = arith.constant 0 : index
    %c0_0 = arith.constant 0 : index
    %0 = vector.load %arg1[%c0, %c0_0] : memref<8x16xf32, #tpu.memory_space<vmem>>, vector<8x16xf32>
    %c0_1 = arith.constant 0 : index
    %c0_2 = arith.constant 0 : index
    %1 = vector.load %arg2[%c0_1, %c0_2] : memref<16x32xf32, #tpu.memory_space<vmem>>, vector<16x32xf32>
    %c0_3 = arith.constant 0 : index
    %c0_4 = arith.constant 0 : index
    %2 = vector.load %arg3[%c0_3, %c0_4] : memref<1x32xf32, #tpu.memory_space<vmem>>, vector<1x32xf32>
    %cst = arith.constant dense<0.000000e+00> : vector<8x32xf32>
    %3 = tpu.matmul %0, %1, %cst {dimension_numbers = #tpu.dot_dimension_numbers<[1], [0], [0], [1], [0, 0, 1, 1], [], []>} : vector<8x16xf32>, vector<16x32xf32>, vector<8x32xf32> -> vector<8x32xf32>
    %4 = vector.broadcast %2 : vector<1x32xf32> to vector<8x32xf32>
    %5 = arith.addf %3, %4 : vector<8x32xf32>
    %6 = math.tanh %5 : vector<8x32xf32>
    %c0_5 = arith.constant 0 : index
    %c0_6 = arith.constant 0 : index
    %7 = vector.load %arg4[%c0_5, %c0_6] : memref<32x32xf32, #tpu.memory_space<vmem>>, vector<32x32xf32>
    %c0_7 = arith.constant 0 : index
    %c0_8 = arith.constant 0 : index
    %8 = vector.load %arg5[%c0_7, %c0_8] : memref<1x32xf32, #tpu.memory_space<vmem>>, vector<1x32xf32>
    %cst_9 = arith.constant dense<0.000000e+00> : vector<8x32xf32>
    %9 = tpu.matmul %6, %7, %cst_9 {dimension_numbers = #tpu.dot_dimension_numbers<[1], [0], [0], [1], [0, 0, 1, 1], [], []>} : vector<8x32xf32>, vector<32x32xf32>, vector<8x32xf32> -> vector<8x32xf32>
    %10 = vector.broadcast %8 : vector<1x32xf32> to vector<8x32xf32>
    %11 = arith.addf %9, %10 : vector<8x32xf32>
    %12 = math.tanh %11 : vector<8x32xf32>
    %c0_10 = arith.constant 0 : index
    %c0_11 = arith.constant 0 : index
    %13 = vector.load %arg6[%c0_10, %c0_11] : memref<32x4xf32, #tpu.memory_space<vmem>>, vector<32x4xf32>
    %c0_12 = arith.constant 0 : index
    %c0_13 = arith.constant 0 : index
    %14 = vector.load %arg7[%c0_12, %c0_13] : memref<1x4xf32, #tpu.memory_space<vmem>>, vector<1x4xf32>
    %cst_14 = arith.constant dense<0.000000e+00> : vector<8x4xf32>
    %15 = tpu.matmul %12, %13, %cst_14 {dimension_numbers = #tpu.dot_dimension_numbers<[1], [0], [0], [1], [0, 0, 1, 1], [], []>} : vector<8x32xf32>, vector<32x4xf32>, vector<8x4xf32> -> vector<8x4xf32>
    %16 = vector.broadcast %14 : vector<1x4xf32> to vector<8x4xf32>
    %17 = arith.addf %15, %16 : vector<8x4xf32>
    %18 = math.tanh %17 : vector<8x4xf32>
    %c0_15 = arith.constant 0 : index
    %c0_16 = arith.constant 0 : index
    %19 = vector.load %arg8[%c0_15, %c0_16] : memref<8x4xf32, #tpu.memory_space<vmem>>, vector<8x4xf32>
    tpu.vector_store %arg8[%c0_15, %c0_16], %18 {strides = array<i32>} : memref<8x4xf32, #tpu.memory_space<vmem>>, vector<8x4xf32>,
    return
  }
  func.func @transform_0(%arg0: i32) -> (i32, i32) {
    %c0_i32 = arith.constant 0 : i32
    %c0_i32_0 = arith.constant 0 : i32
    return %arg0, %c0_i32 : i32, i32
  }
  func.func @transform_1(%arg0: i32) -> (i32, i32) {
    %c0_i32 = arith.constant 0 : i32
    %c0_i32_0 = arith.constant 0 : i32
    %c0_i32_1 = arith.constant 0 : i32
    return %c0_i32, %c0_i32_0 : i32, i32
  }
  func.func @transform_2(%arg0: i32) -> (i32, i32) {
    %c0_i32 = arith.constant 0 : i32
    %c0_i32_0 = arith.constant 0 : i32
    %c0_i32_1 = arith.constant 0 : i32
    return %c0_i32, %c0_i32_0 : i32, i32
  }
  func.func @transform_3(%arg0: i32) -> (i32, i32) {
    %c0_i32 = arith.constant 0 : i32
    %c0_i32_0 = arith.constant 0 : i32
    %c0_i32_1 = arith.constant 0 : i32
    return %c0_i32, %c0_i32_0 : i32, i32
  }
  func.func @transform_4(%arg0: i32) -> (i32, i32) {
    %c0_i32 = arith.constant 0 : i32
    %c0_i32_0 = arith.constant 0 : i32
    %c0_i32_1 = arith.constant 0 : i32
    return %c0_i32, %c0_i32_0 : i32, i32
  }
  func.func @transform_5(%arg0: i32) -> (i32, i32) {
    %c0_i32 = arith.constant 0 : i32
    %c0_i32_0 = arith.constant 0 : i32
    %c0_i32_1 = arith.constant 0 : i32
    return %c0_i32, %c0_i32_0 : i32, i32
  }
  func.func @transform_6(%arg0: i32) -> (i32, i32) {
    %c0_i32 = arith.constant 0 : i32
    %c0_i32_0 = arith.constant 0 : i32
    %c0_i32_1 = arith.constant 0 : i32
    return %c0_i32, %c0_i32_0 : i32, i32
  }
  func.func @transform_7(%arg0: i32) -> (i32, i32) {
    %c0_i32 = arith.constant 0 : i32
    %c0_i32_0 = arith.constant 0 : i32
    return %arg0, %c0_i32 : i32, i32
  }
}

</mosaic_0001>

<bundles_post_ra>
// kernel: tpu_custom_call.1
= control target key start
LH: loop header
LB: loop body
LE: loop exit
PB: predicated region body
PF: predicated region fallthrough
CT: control target
= control target key end

     0   :  { %12 = vsyncpa [#allocation3], 0  ;;  %s317_s0 = inlined_call_operand.hbm [shape: f32[8,16], index: 0, kind: input, shape index: {}]   ;;  %s318_s1 = inlined_call_operand.hbm [shape: f32[16,32], index: 1, kind: input, shape index: {}]   ;;  %s319_s2 = inlined_call_operand.vmem [shape: f32[1,32], index: 2, kind: input, shape index: {}]   ;;  %s320_s3 = inlined_call_operand.vmem [shape: f32[32,32], index: 3, kind: input, shape index: {}]   ;;  %s321_s4 = inlined_call_operand.vmem [shape: f32[1,32], index: 4, kind: input, shape index: {}]   ;;  %s322_s5 = inlined_call_operand.vmem [shape: f32[32,4], index: 5, kind: input, shape index: {}]   ;;  %s323_s6 = inlined_call_operand.vmem [shape: f32[1,4], index: 6, kind: input, shape index: {}]   ;;  %s324_s7 = inlined_call_operand.vmem [shape: f32[8,4], index: 7, kind: output, shape index: {}]  }
   0x1   :  { %s19_s26 = sshll.u32 %s317_s0, 4  ;;  %s20_s26 = int_to_ptr.hbm [resolvable:$true] %s19_s26 }
   0x2   :  { %13 = vsyncpa [#allocation5], 0  ;;  %s229_s27 = smov [#allocation2]   ;;  %s29_s8 = sshll.u32 %s318_s1, 4  ;;  %s30_s8 = int_to_ptr.hbm [resolvable:$true] %s29_s8 }
   0x3   :  { %s21_s28 = sshll.u32 %s229_s27, 4  ;;  %s230_s9 = smov [#allocation4]   ;;  %s22_s28 = int_to_ptr.vmem [resolvable:$true] %s21_s28 }
   0x4   :  { %24 = dma.hbm_to_vmem [thread:$0]  %s20_s26, 128, %s22_s28, [#allocation3]  }
   0x5   :  { %s31_s10 = sshll.u32 %s230_s9, 4  ;;  %s231_s11 = smov 128   ;;  %s32_s10 = int_to_ptr.vmem [resolvable:$true] %s31_s10 }
   0x6   :  { %s232_s12 = smov 8  }
   0x7   :  { %37 = dma.hbm_to_vmem [thread:$0]  %s30_s8, 256, %s32_s10, [#allocation5], %s231_s11, %s231_s11, %s232_s12  }
   0x8   :  { %225 = dma.done.wait [#allocation3], 128  }
   0x9   :  { %226 = vsyncadd [#allocation3], 4294967168 }
   0xa   :  { %227 = dma.done.wait [#allocation5], 256  }
   0xb   :  { %228 = vsyncadd [#allocation5], 4294967040  ;;  %v58_v0 = vld [vmem:[#allocation4 + $0x8] sm:$0xff]  ;;  %v57_v1 = vld [vmem:[#allocation4] sm:$0xff]  ;;  %vm63_vm0 = vcmask 130048   ;;  %vm96_vm1 = vcmask 261120  }
   0xc   :  { %81 = vmatpush.msra.mxu0 %v58_v0  ;;  %v56_v2 = vld [vmem:[#allocation2] sm:$0xff]  ;;  %v91_v3 = vld [vmem:[%s320_s3 + $0x18] sm:$0xff]  ;;  %v90_v4 = vld [vmem:[%s320_s3 + $0x10] sm:$0xff]  ;;  %vm153_vm2 = vcmask 31744  }
   0xd   :  { %112 = vmatpush.msra.mxu1 %v91_v3  ;;  %v89_v5 = vld [vmem:[%s320_s3 + $0x8] sm:$0xff]  ;;  %v88_v6 = vld [vmem:[%s320_s3] sm:$0xff]  ;;  %v124_v11 = vld [vmem:[%s322_s5 + $0x18] sm:$0xff] }
   0xe   :  { %82 = vmatpush.msra.mxu0 %v57_v1  ;;  %v168_v7 = vld [vmem:[%s319_s2] ss:$0 sm:$0xff]  ;;  %144 = vmatpush.msra.mxu2 %v124_v11  ;;  %v123_v12 = vld [vmem:[%s322_s5 + $0x10] sm:$0xff]  ;;  %v122_v13 = vld [vmem:[%s322_s5 + $0x8] sm:$0xff] }
   0xf   :  { %161 = vmatmul.msk.f32.vlgmr.msra.gmra.mxu0 %vm63_vm0, %v56_v2  ;;  %113 = vmatpush.msra.mxu1 %v90_v4  ;;  %v121_v14 = vld [vmem:[%s322_s5] sm:$0xff] }
  0x10   :  { %145 = vmatpush.msra.mxu2 %v123_v12  ;;  %v169_v15 = vld [vmem:[%s321_s4] ss:$0 sm:$0xff] }
  0x11   :  { %114 = vmatpush.msra.mxu1 %v89_v5  ;;  %v170_v19 = vld [vmem:[%s323_s6] ss:$0 sm:$0xff] }
  0x12   :  { %146 = vmatpush.msra.mxu2 %v122_v13 }
  0x13   :  { %115 = vmatpush.msra.mxu1 %v88_v6 }
  0x14   :  { %147 = vmatpush.msra.mxu2 %v121_v14 }
  0x8c   :  { %v84_v8 = vpop.f32.mrf.mxu0 }
  0x8d   :  { %v85_v9 = vadd.f32 %v168_v7, %v84_v8 }
  0x8f   :  { %171 = vtanh.f32 %v85_v9 }
  0x95   :  { %v172_v10 = vpop.eup %171 }
  0x96   :  { %162 = vmatmul.msk.f32.vlgmr.msra.gmra.mxu1 %vm96_vm1, %v172_v10 }
 0x113   :  { %v117_v16 = vpop.f32.mrf.mxu1 }
 0x114   :  { %v118_v17 = vadd.f32 %v169_v15, %v117_v16 }
 0x116   :  { %173 = vtanh.f32 %v118_v17 }
 0x11c   :  { %v174_v18 = vpop.eup %173 }
 0x11d   :  { %163 = vmatmul.msk.f32.vlgmr.msra.gmra.mxu2 %vm96_vm1, %v174_v18 }
 0x1a0   :  { %v149_v20 = vpop.f32.mrf.mxu2 }
 0x1a1   :  { %v150_v21 = vadd.f32 %v170_v19, %v149_v20 }
 0x1a3   :  { %175 = vtanh.f32 %v150_v21 }
 0x1a9   :  { %v176_v22 = vpop.eup %175 }
 0x1aa   :  { %154 = vst.msk [vmem:[%s324_s7] sm:$0xff] %vm153_vm2, %v176_v22 }
 0x1ab   :  { %159 = vsyncpa [#allocation3], 1 }
 0x1ac   :  { %160 = vsyncpa [#allocation5], 1 }

</bundles_post_ra>
